<compile_context>
chip_gen: v5e
topology: v5e:2x2
jax: 0.10.0
libtpu: 0.0.40
codegen_flags: <defaults>
</compile_context>

<pallas_src>
import functools

import jax
import jax.numpy as jnp
from jax.experimental import pallas as pl
from jax.experimental.pallas import tpu as pltpu


def _round_up(x: int, m: int) -> int:
    return ((x + m - 1) // m) * m


def _round_down(x: int, m: int) -> int:
    return (x // m) * m


def _cdiv(a: int, b: int) -> int:
    return (a + b - 1) // b


def _maybe_single_buffered(block_shape, index_map, bufs):
    """BlockSpec with pipeline_mode=pl.Buffered(bufs); graceful fallback."""
    if hasattr(pl, "Buffered"):
        try:
            return pl.BlockSpec(block_shape, index_map,
                                pipeline_mode=pl.Buffered(bufs))
        except TypeError:
            pass
    return pl.BlockSpec(block_shape, index_map)


def _calibrator_kernel(topics_ref, logits_ref, b_ref, a_ref, out_ref, *,
                       shift_then_scale: bool):
    # topics_ref : (TM, 1)         int32  -- topic id per example (pre-clamped)
    # logits_ref : (TM, TC)        io-dtype (f32 or bf16)
    # b_ref      : (T, TC)         f32    -- bias rows for this class tile
    # a_ref      : (T, 128)        f32    -- exp(loga) replicated across 128 lanes
    # out_ref    : (TM, TC)        io-dtype
    t = topics_ref[...]                                       # (TM, 1)
    tm = t.shape[0]
    n_topics = b_ref.shape[0]
    tc = b_ref.shape[1]

    # One-hot gather via MXU matmul (exact in f32: a single 1.0 per row).
    topic_iota = jax.lax.broadcasted_iota(jnp.int32, (tm, n_topics), 1)
    one_hot = (t == topic_iota).astype(jnp.float32)           # (TM, T)

    b_per = jnp.dot(one_hot, b_ref[...],
                    preferred_element_type=jnp.float32)       # (TM, TC)
    s_slab = jnp.dot(one_hot, a_ref[...],
                     preferred_element_type=jnp.float32)      # (TM, 128)

    # The slab already replicates exp(loga) across 128 lanes -> reuse it directly
    # instead of lane-extract + per-vreg broadcast (keeps XLU slots clear).
    if tc <= 128:
        scale = s_slab[:, :tc]                                # static lane slice
    elif tc % 128 == 0:
        scale = jnp.tile(s_slab, (1, tc // 128))              # whole-vreg replication
    else:
        scale = s_slab[:, :1]                                 # (TM,1) broadcast

    x = logits_ref[...].astype(jnp.float32)
    if shift_then_scale:
        y = (x + b_per) * scale
    else:
        y = x * scale + b_per
    out_ref[...] = y.astype(out_ref.dtype)


def torch_calibrator_forward(logits, topics, loga, b, *,
                             n_topics, n_classes,
                             share_a=False, share_b=False,
                             shift_then_scale=False,
                             max_class_tile=2048,
                             target_block_bytes=4 * 1024 * 1024,
                             row_tile=None,
                             vmem_budget_bytes=None):
    """Pallas implementation of TorchCalibrator.forward.

    logits: (N, n_classes), f32 or bf16 (output keeps the same dtype)
    topics: (N,) integer topic ids
    loga:   (1,) if share_a else (n_topics,)
    b:      (n_classes,) if share_b else (n_topics, n_classes)

    Note: out-of-range topic ids are clamped to [0, n_topics-1] (PyTorch
    indexing would raise instead) -- intentional, documented semantic diff.
    """
    N, C = logits.shape
    assert C == n_classes
    io_dtype = logits.dtype
    io_bytes = logits.dtype.itemsize
    # Native sublane tiling: 8 rows for 32-bit, 16 for bf16, 32 for int8.
    sub = {1: 32, 2: 16}.get(io_bytes, 8)

    # ---------------- class-axis tiling (2-D grid only for very wide C) -------
    if C <= max_class_tile:
        tc, nc, C_tab = C, 1, C          # full-width block (legal for any C)
    else:
        tc = max(128, _round_down(max_class_tile, 128))
        nc = _cdiv(C, tc)
        C_tab = nc * tc                  # only the (small) bias table is padded

    # ---------------- build small gather tables ONCE in the wrapper -----------
    if share_a:
        a_exp = jnp.broadcast_to(
            jnp.exp(jnp.reshape(loga, (1,)).astype(jnp.float32)), (n_topics,))
    else:
        a_exp = jnp.exp(jnp.reshape(loga, (n_topics,)).astype(jnp.float32))
    a_tab = jnp.broadcast_to(a_exp[:, None], (n_topics, 128)).astype(jnp.float32)

    if share_b:
        b_full = jnp.broadcast_to(jnp.reshape(b, (1, n_classes)),
                                  (n_topics, n_classes))
    else:
        b_full = jnp.reshape(b, (n_topics, n_classes))
    b_tab = b_full.astype(jnp.float32)
    if C_tab != C:
        b_tab = jnp.pad(b_tab, ((0, 0), (0, C_tab - C)))      # tiny array

    # Only O(N) bytes touched in the wrapper (no full logits copy).
    topics2d = jnp.clip(topics.astype(jnp.int32), 0, n_topics - 1).reshape(N, 1)

    # ---------------- VMEM budget / limit per device generation ---------------
    try:
        vmem_cap = int(pltpu.get_tpu_info().vmem_capacity_bytes)
    except Exception:
        vmem_cap = 64 * 1024 * 1024                            # safe (v7x-sized) fallback
    if vmem_budget_bytes is None:
        vmem_budget_bytes = (28 * 1024 * 1024 if vmem_cap <= 64 * 1024 * 1024
                             else 72 * 1024 * 1024)
    limit_cap = min(3 * vmem_cap // 4, 96 * 1024 * 1024)       # never the full physical VMEM

    # ---------------- row tile selection --------------------------------------
    if row_tile is not None:
        tm_eff = max(sub, _round_up(int(row_tile), sub))
    else:
        tm_target = min(8192, max(sub, target_block_bytes // max(tc * io_bytes, 1)))
        # Aim for >= 8 row tiles (2-TC balance on v7x), but never shrink the
        # logits block below ~512 KiB just for step count.
        tm_8tiles = _round_up(max(_cdiv(N, 8), 1), sub)
        tm_floor = _round_up(max((512 * 1024) // max(tc * io_bytes, 1), sub), sub)
        tm_eff = min(tm_target, max(tm_8tiles, tm_floor))
    tm_eff = max(sub, _round_down(tm_eff, sub))
    tm_eff = min(tm_eff, _round_up(N, sub))

    n_topics_sub = _round_up(n_topics, 8)
    a_tab_bytes = n_topics_sub * 128 * 4                       # single-buffered
    b_tab_bytes = (1 if nc == 1 else 2) * n_topics_sub * (C_tab if nc == 1 else tc) * 4

    def step_vmem_bytes(t):
        io = 2 * 2 * t * tc * io_bytes          # logits + out blocks, double-buffered
        topic = 2 * t * 128 * 4                 # (t,1) int32 column (lane-padded), dbl-buf
        onehot = t * max(128, _round_up(n_topics, 128)) * 4    # live matmul LHS operand
        return io + topic + onehot + a_tab_bytes + b_tab_bytes

    while tm_eff > sub and step_vmem_bytes(tm_eff) > vmem_budget_bytes:
        tm_eff = max(sub, _round_down(tm_eff // 2, sub))

    if tm_eff >= N:
        tm_eff = N                               # single full-extent row tile

    nr = _cdiv(N, tm_eff)
    grid = (nr, nc)

    vmem_limit = int(min(limit_cap,
                         max(32 * 1024 * 1024, step_vmem_bytes(tm_eff) * 3 // 2)))

    kernel = functools.partial(_calibrator_kernel,
                               shift_then_scale=shift_then_scale)

    # Advisory cost: strictly memory-bound custom call (read + write N*C).
    cost = pl.CostEstimate(
        flops=2 * N * n_topics * (C_tab + 128) + 3 * N * C,
        transcendentals=0,
        bytes_accessed=2 * N * C * io_bytes + N * 4
        + n_topics * (C_tab + 128) * 4)

    # Resident tables: single-buffer when their block index never changes.
    a_spec = _maybe_single_buffered((n_topics, 128), lambda i, j: (0, 0), 1)
    if nc == 1:
        b_spec = _maybe_single_buffered((n_topics, tc), lambda i, j: (0, j), 1)
    else:
        b_spec = pl.BlockSpec((n_topics, tc), lambda i, j: (0, j))

    # TODO(synk): for large n_topics the one-hot MXU gather should switch to a
    # scalar-prefetched per-row gather (PrefetchScalarGridSpec + pl.Element);
    # crossover ~128 topics on v5e (f32 MXU emulated), ~512 on v6e/v7x.
    out = pl.pallas_call(
        kernel,
        out_shape=jax.ShapeDtypeStruct((N, C), io_dtype),
        grid_spec=pltpu.PrefetchScalarGridSpec(
            num_scalar_prefetch=0,
            grid=grid,
            in_specs=[
                pl.BlockSpec((tm_eff, 1), lambda i, j: (i, 0)),      # topics
                pl.BlockSpec((tm_eff, tc), lambda i, j: (i, j)),     # logits
                b_spec,                                              # bias table
                a_spec,                                              # exp(loga) slab
            ],
            out_specs=pl.BlockSpec((tm_eff, tc), lambda i, j: (i, j)),
        ),
        compiler_params=pltpu.CompilerParams(
            dimension_semantics=("parallel", "parallel"),
            vmem_limit_bytes=vmem_limit),
        cost_estimate=cost,
    )(topics2d, logits, b_tab, a_tab)

    return out


def _reference_forward(logits, topics, loga, b, *, share_a, share_b,
                       shift_then_scale):
    # Pure-JAX mirror of the PyTorch forward for verification (f32 math).
    logits = logits.astype(jnp.float32)
    if share_a:
        scales = jnp.broadcast_to(jnp.exp(loga[0]), (logits.shape[0], 1))
    else:
        scales = jnp.exp(loga)[topics][:, None]
    if share_b:
        b_per = jnp.broadcast_to(b[None, :], (logits.shape[0], b.shape[0]))
    else:
        b_per = b[topics]
    if shift_then_scale:
        return (logits + b_per) * scales
    return logits * scales + b_per


if __name__ == "__main__":
    key = jax.random.PRNGKey(0)

    # --- Config 1: f32 I/O, per-topic a & b, scale-then-shift ------------------
    N, n_classes, n_topics = 16, 32, 8
    k1, k2, k3, k4 = jax.random.split(key, 4)
    logits = jax.random.normal(k1, (N, n_classes), dtype=jnp.float32)
    topics = jax.random.randint(k2, (N,), 0, n_topics, dtype=jnp.int32)
    loga = 0.1 * jax.random.normal(k3, (n_topics,), dtype=jnp.float32)
    b = 0.1 * jax.random.normal(k4, (n_topics, n_classes), dtype=jnp.float32)

    out = torch_calibrator_forward(
        logits, topics, loga, b,
        n_topics=n_topics, n_classes=n_classes,
        share_a=False, share_b=False, shift_then_scale=False)
    out = jax.block_until_ready(out)
    ref = _reference_forward(logits, topics, loga, b,
                             share_a=False, share_b=False,
                             shift_then_scale=False)
    assert out.shape == (N, n_classes)
    assert jnp.allclose(out, ref, atol=1e-5, rtol=1e-5)

    # --- Config 2: bf16 I/O, shared a & b, shift-then-scale, ragged N ----------
    N2 = 13
    k5, k6, k7, k8 = jax.random.split(jax.random.PRNGKey(0), 4)
    logits2 = jax.random.normal(k5, (N2, n_classes), dtype=jnp.float32).astype(jnp.bfloat16)
    topics2 = jax.random.randint(k6, (N2,), 0, n_topics, dtype=jnp.int32)
    loga2 = 0.1 * jax.random.normal(k7, (1,), dtype=jnp.float32)
    b2 = 0.1 * jax.random.normal(k8, (n_classes,), dtype=jnp.float32)

    out2 = torch_calibrator_forward(
        logits2, topics2, loga2, b2,
        n_topics=n_topics, n_classes=n_classes,
        share_a=True, share_b=True, shift_then_scale=True)
    out2 = jax.block_until_ready(out2)
    assert out2.dtype == jnp.bfloat16 and out2.shape == (N2, n_classes)
    ref2 = _reference_forward(logits2, topics2, loga2, b2,
                              share_a=True, share_b=True,
                              shift_then_scale=True)
    assert jnp.allclose(out2.astype(jnp.float32), ref2, atol=5e-2, rtol=5e-2)

    # --- Config 3: wide-C path (2-D grid, ragged rows + ragged class tile) -----
    N3, C3, T3 = 21, 600, 5
    k9, k10, k11, k12 = jax.random.split(jax.random.PRNGKey(1), 4)
    logits3 = jax.random.normal(k9, (N3, C3), dtype=jnp.float32)
    topics3 = jax.random.randint(k10, (N3,), 0, T3, dtype=jnp.int32)
    loga3 = 0.1 * jax.random.normal(k11, (T3,), dtype=jnp.float32)
    b3 = 0.1 * jax.random.normal(k12, (C3,), dtype=jnp.float32)

    out3 = torch_calibrator_forward(
        logits3, topics3, loga3, b3,
        n_topics=T3, n_classes=C3,
        share_a=False, share_b=True, shift_then_scale=True,
        max_class_tile=256, row_tile=8)       # forces grid=(3,3) with ragged tails
    out3 = jax.block_until_ready(out3)
    ref3 = _reference_forward(logits3, topics3, loga3, b3,
                              share_a=False, share_b=True,
                              shift_then_scale=True)
    assert out3.shape == (N3, C3)
    assert jnp.allclose(out3, ref3, atol=1e-5, rtol=1e-5)

    print("KERNEL_OK")
</pallas_src>

<mosaic_0001>
module attributes {stable_mosaic.version = 11 : i64} {
  func.func @_calibrator_kernel(%arg0: i32, %arg1: i32, %arg2: memref<16x1xi32, #tpu.memory_space<vmem>>, %arg3: memref<16x32xf32, #tpu.memory_space<vmem>>, %arg4: memref<8x32xf32, #tpu.memory_space<vmem>>, %arg5: memref<8x128xf32, #tpu.memory_space<vmem>>, %arg6: memref<16x32xf32, #tpu.memory_space<vmem>>) attributes {dimension_semantics = [#tpu.dimension_semantics<parallel>, #tpu.dimension_semantics<parallel>], iteration_bounds = array<i64: 1, 1>, scalar_prefetch = 0 : i64, scratch_operands = 0 : i64, tpu.core_type = #tpu.core_type<tc>, window_params = [{transform_indices = @transform_0, window_bounds = array<i64: 16, 1>}, {transform_indices = @transform_1, window_bounds = array<i64: 16, 32>}, {pipeline_mode = #tpu.pipeline_mode<synchronous>, transform_indices = @transform_2, window_bounds = array<i64: 8, 32>}, {pipeline_mode = #tpu.pipeline_mode<synchronous>, transform_indices = @transform_3, window_bounds = array<i64: 8, 128>}, {transform_indices = @transform_4, window_bounds = array<i64: 16, 32>}]} {
    %c0 = arith.constant 0 : index
    %c0_0 = arith.constant 0 : index
    %0 = vector.load %arg2[%c0, %c0_0] : memref<16x1xi32, #tpu.memory_space<vmem>>, vector<16x1xi32>
    %1 = tpu.iota {dimensions = array<i32: 1>} : vector<16x8xi32>
    %2 = vector.broadcast %0 : vector<16x1xi32> to vector<16x8xi32>
    %3 = arith.cmpi eq, %2, %1 : vector<16x8xi32>
    %4 = arith.extui %3 : vector<16x8xi1> to vector<16x8xi32>
    %5 = arith.sitofp %4 : vector<16x8xi32> to vector<16x8xf32>
    %c0_1 = arith.constant 0 : index
    %c0_2 = arith.constant 0 : index
    %6 = vector.load %arg4[%c0_1, %c0_2] : memref<8x32xf32, #tpu.memory_space<vmem>>, vector<8x32xf32>
    %cst = arith.constant dense<0.000000e+00> : vector<16x32xf32>
    %7 = tpu.matmul %5, %6, %cst {dimension_numbers = #tpu.dot_dimension_numbers<[1], [0], [0], [1], [0, 0, 1, 1], [], []>} : vector<16x8xf32>, vector<8x32xf32>, vector<16x32xf32> -> vector<16x32xf32>
    %c0_3 = arith.constant 0 : index
    %c0_4 = arith.constant 0 : index
    %8 = vector.load %arg5[%c0_3, %c0_4] : memref<8x128xf32, #tpu.memory_space<vmem>>, vector<8x128xf32>
    %cst_5 = arith.constant dense<0.000000e+00> : vector<16x128xf32>
    %9 = tpu.matmul %5, %8, %cst_5 {dimension_numbers = #tpu.dot_dimension_numbers<[1], [0], [0], [1], [0, 0, 1, 1], [], []>} : vector<16x8xf32>, vector<8x128xf32>, vector<16x128xf32> -> vector<16x128xf32>
    %10 = vector.extract_strided_slice %9 {offsets = [0, 0], sizes = [16, 32], strides = [1, 1]} : vector<16x128xf32> to vector<16x32xf32>
    %c0_6 = arith.constant 0 : index
    %c0_7 = arith.constant 0 : index
    %11 = vector.load %arg3[%c0_6, %c0_7] : memref<16x32xf32, #tpu.memory_space<vmem>>, vector<16x32xf32>
    %12 = arith.mulf %11, %10 : vector<16x32xf32>
    %13 = arith.addf %12, %7 : vector<16x32xf32>
    %c0_8 = arith.constant 0 : index
    %c0_9 = arith.constant 0 : index
    %14 = vector.load %arg6[%c0_8, %c0_9] : memref<16x32xf32, #tpu.memory_space<vmem>>, vector<16x32xf32>
    tpu.vector_store %arg6[%c0_8, %c0_9], %13 {strides = array<i32>} : memref<16x32xf32, #tpu.memory_space<vmem>>, vector<16x32xf32>,
    return
  }
  func.func @transform_0(%arg0: i32, %arg1: i32) -> (i32, i32) {
    %c0_i32 = arith.constant 0 : i32
    %c0_i32_0 = arith.constant 0 : i32
    return %arg0, %c0_i32 : i32, i32
  }
  func.func @transform_1(%arg0: i32, %arg1: i32) -> (i32, i32) {
    %c0_i32 = arith.constant 0 : i32
    return %arg0, %arg1 : i32, i32
  }
  func.func @transform_2(%arg0: i32, %arg1: i32) -> (i32, i32) {
    %c0_i32 = arith.constant 0 : i32
    %c0_i32_0 = arith.constant 0 : i32
    return %c0_i32, %arg1 : i32, i32
  }
  func.func @transform_3(%arg0: i32, %arg1: i32) -> (i32, i32) {
    %c0_i32 = arith.constant 0 : i32
    %c0_i32_0 = arith.constant 0 : i32
    %c0_i32_1 = arith.constant 0 : i32
    return %c0_i32, %c0_i32_0 : i32, i32
  }
  func.func @transform_4(%arg0: i32, %arg1: i32) -> (i32, i32) {
    %c0_i32 = arith.constant 0 : i32
    return %arg0, %arg1 : i32, i32
  }
}

</mosaic_0001>

<bundles_post_ra>
// kernel: tpu_custom_call.1
= control target key start
LH: loop header
LB: loop body
LE: loop exit
PB: predicated region body
PF: predicated region fallthrough
CT: control target
= control target key end

     0   :  { %9 = vsyncpa [#allocation3], 0  ;;  %s293_s0 = inlined_call_operand.vmem [shape: s32[16,1], index: 0, kind: input, shape index: {}]   ;;  %s294_s1 = inlined_call_operand.vmem [shape: f32[16,32], index: 1, kind: input, shape index: {}]   ;;  %s295_s2 = inlined_call_operand.hbm [shape: f32[8,32], index: 2, kind: input, shape index: {}]   ;;  %s296_s3 = inlined_call_operand.hbm [shape: f32[8,128], index: 3, kind: input, shape index: {}]   ;;  %s297_s4 = inlined_call_operand.hbm [shape: f32[16,32], index: 4, kind: output, shape index: {}]  }
   0x1   :  { %10 = vsyncpa [#allocation6], 0 }
   0x2   :  { %11 = vsyncpa [#allocation4], 0  ;;  %s21_s17 = sshll.u32 %s295_s2, 4  ;;  %s240_s18 = smov [#allocation2]   ;;  %s22_s17 = int_to_ptr.hbm [resolvable:$true] %s21_s17 }
   0x3   :  { %s23_s19 = sshll.u32 %s240_s18, 4  ;;  %s32_s22 = sshll.u32 %s296_s3, 4  ;;  %s24_s19 = int_to_ptr.vmem [resolvable:$true] %s23_s19  ;;  %s33_s22 = int_to_ptr.hbm [resolvable:$true] %s32_s22 }
   0x4   :  { %26 = dma.hbm_to_vmem [thread:$0]  %s22_s17, 128, %s24_s19, [#allocation3]  }
   0x5   :  { %s241_s23 = smov [#allocation5]  }
   0x6   :  { %s34_s24 = sshll.u32 %s241_s23, 4  ;;  %s35_s24 = int_to_ptr.vmem [resolvable:$true] %s34_s24 }
   0x7   :  { %37 = dma.hbm_to_vmem [thread:$0]  %s33_s22, 128, %s35_s24, [#allocation6]  }
   0x8   :  { %234 = dma.done.wait [#allocation3], 128  }
   0x9   :  { %235 = vsyncadd [#allocation3], 4294967168 }
   0xa   :  { %236 = dma.done.wait [#allocation6], 128  }
   0xb   :  { %237 = vsyncadd [#allocation6], 4294967168  ;;  %v242_v0 = vmov 0   ;;  %v47_v1 = vld [vmem:[%s293_s0 + $0x8] sm:$0xff]  ;;  %v46_v2 = vld [vmem:[%s293_s0] sm:$0xff]  ;;  %v48_v5 = vlaneseq  ;;  %vm63_vm0 = vcmask 64512  }
   0xc   :  { %161 = vset.pattern.permute.xlu0 %v242_v0  ;;  %v62_v3 = vld [vmem:[#allocation2] sm:$0xff]  ;;  %v93_v4 = vld [vmem:[#allocation5] sm:$0xff]  ;;  %v243_v8 = vmov 0.0   ;;  %s244_s30 = smov [#allocation7]   ;;  %s132_s8 = sshll.u32 %s297_s4, 4  ;;  %vm123_vm3 = vcmask 261120   ;;  %s133_s8 = int_to_ptr.hbm [resolvable:$true] %s132_s8 }
   0xd   :  { %54 = vperm.xlu0 %161, %v47_v1   ;;  %152 = vmatpush.msra.mxu2 %v62_v3  ;;  %v49_v6 = vand.u32 127, %v48_v5  ;;  %v118_v12 = vld [vmem:[%s294_s1 + $0x8] sm:$0xff]  ;;  %v117_v14 = vld [vmem:[%s294_s1] sm:$0xff]  ;;  %s130_s5 = sshll.u32 %s244_s30, 4  ;;  %s245_s9 = smov 128   ;;  %s131_s5 = int_to_ptr.vmem [resolvable:$true] %s130_s5 }
   0xe   :  { %153 = vmatpush.msra.mxu3 %v93_v4  ;;  %85 = vmatpush.msra.mxu0 %v62_v3  ;;  %s246_s1 = smov 8  }
   0xf   :  { %109 = vmatpush.msra.mxu1 %v93_v4 }
  0x15   :  { %51 = vperm.xlu0 %161, %v46_v2  }
  0x7f   :  { %v55_v7 = vpop.permute.xlu0 %54 }
  0x80   :  { %vm57_vm1 = vcmp.eq.s32.totalorder %v55_v7, %v49_v6 }
  0x81   :  { %v147_v9 = vsel %vm57_vm1, 1.0, %v243_v8 }
  0x82   :  { %149 = vmatmul.msk.f32.vlgmr.msra.gmra.mxu2 %vm63_vm0, %v147_v9  ;;  %151 = vmatmul.msk.f32.vlgmr.msra.gmra.mxu3 %vm63_vm0, %v147_v9 }
  0x87   :  { %v52_v10 = vpop.permute.xlu0 %51 }
  0x88   :  { %vm56_vm2 = vcmp.eq.s32.totalorder %v52_v10, %v49_v6 }
  0x89   :  { %v146_v11 = vsel %vm56_vm2, 1.0, %v243_v8 }
  0x8a   :  { %148 = vmatmul.msk.f32.vlgmr.msra.gmra.mxu0 %vm63_vm0, %v146_v11  ;;  %150 = vmatmul.msk.f32.vlgmr.msra.gmra.mxu1 %vm63_vm0, %v146_v11 }
 0x105   :  { %v114_v13 = vpop.f32.mrf.mxu3  ;;  %v90_v16 = vpop.f32.mrf.mxu2 }
 0x106   :  { %v120_v15 = vmul.f32 %v118_v12, %v114_v13 }
 0x107   :  { %v111_v17 = vpop.f32.mrf.mxu1  ;;  %v87_v20 = vpop.f32.mrf.mxu0 }
 0x108   :  { %v122_v18 = vadd.f32 %v120_v15, %v90_v16  ;;  %v119_v19 = vmul.f32 %v117_v14, %v111_v17 }
 0x10a   :  { %125 = vst.msk [vmem:[#allocation7 + $0x8] sm:$0xff] %vm123_vm3, %v122_v18  ;;  %v121_v21 = vadd.f32 %v119_v19, %v87_v20 }
 0x10c   :  { %124 = vst.msk [vmem:[#allocation7] sm:$0xff] %vm123_vm3, %v121_v21 }
 0x10d   :  { %138 = dma.vmem_to_hbm [thread:$0]  %s131_s5, 256, %s133_s8, [#allocation4], %s245_s9, %s245_s9, %s246_s1  }
 0x10e   :  { %238 = dma.done.wait [#allocation4], 256  }
 0x10f   :  { %239 = vsyncadd [#allocation4], 4294967040 }
 0x110   :  { %143 = vsyncpa [#allocation3], 1 }
 0x111   :  { %144 = vsyncpa [#allocation6], 1 }
 0x112   :  { %145 = vsyncpa [#allocation4], 1 }

</bundles_post_ra>
